<compile_context>
chip_gen: v5e
topology: v5e:2x2
jax: 0.10.0
libtpu: 0.0.40
codegen_flags: <defaults>
</compile_context>

<pallas_src>
import functools

import jax
import jax.numpy as jnp
from jax.experimental import pallas as pl
from jax.experimental.pallas import tpu as pltpu


def _round_up(a, b):
    return (a + b - 1) // b * b


def _mlp_kernel(x_ref, we_ref, be_ref, w1_ref, b1_ref, w2_ref, b2_ref, o_ref):
    """Fused pointwise MLP, channels-first layout (tokens on the lane axis).

    x_ref:  (C_IN, TT)   f32 tile of tokens
    we_ref: (E, C_IN)    f32 encoder weight (out, in)
    be_ref: (E, 1)       f32
    w1_ref: (P, E)       bf16 or f32
    b1_ref: (P, 1)       f32
    w2_ref: (4, P)       bf16 or f32
    b2_ref: (4, 1)       f32
    o_ref:  (4, TT)      f32
    """
    x = x_ref[...]                                   # (C_IN, TT) f32
    c_in = x_ref.shape[0]
    mxu_dtype = w1_ref.dtype

    # ---- Synthetic encoder: 1x1 conv + ReLU ------------------------------
    # K == C_IN is tiny (4): do it as C_IN broadcast multiply-adds on the VPU
    # (which has slack at large TT) and keep the MXU free for the big layers.
    if c_in <= 8:
        h = we_ref[:, 0:1] * x[0:1, :]               # (E, TT) f32
        for k in range(1, c_in):
            h = h + we_ref[:, k:k + 1] * x[k:k + 1, :]
    else:
        h = jnp.dot(we_ref[...].astype(mxu_dtype), x.astype(mxu_dtype),
                    preferred_element_type=jnp.float32)
    h = jnp.maximum(h + be_ref[...], 0.0)

    # ---- mlp[0]: Conv2d(E, P, 1)  +  mlp[1]: ReLU   (MXU, f32 accum) ------
    h = jnp.dot(w1_ref[...], h.astype(mxu_dtype),
                preferred_element_type=jnp.float32) + b1_ref[...]
    h = jnp.maximum(h, 0.0)

    # ---- mlp[2]: Conv2d(P, 4, 1)  +  mlp[3]: Sigmoid ----------------------
    h = jnp.dot(w2_ref[...], h.astype(mxu_dtype),
                preferred_element_type=jnp.float32) + b2_ref[...]
    o_ref[...] = jax.nn.sigmoid(h).astype(o_ref.dtype)


@functools.partial(jax.jit, static_argnames=("tt", "use_bf16"))
def clip2d_ccl_forward(x_nchw, params, *, tt=16384, use_bf16=True):
    """x_nchw: (N, C, H, W) float32 -> (N, 4, H, W) float32."""
    n, c, h, w = x_nchw.shape
    t = h * w

    we, be = params["w_enc"], params["b_enc"]
    w1, b1 = params["w1"], params["b1"]
    w2, b2 = params["w2"], params["b2"]
    e, p, c_out = we.shape[0], w1.shape[0], w2.shape[0]

    if use_bf16:
        # Weights for the MXU layers are cast once; biases / encoder stay f32.
        w1 = w1.astype(jnp.bfloat16)
        w2 = w2.astype(jnp.bfloat16)

    # ---- token-tile selection --------------------------------------------
    tt = max(512, _round_up(tt, 512))          # 512-aligned (256-lane MXU)
    t128 = _round_up(t, 128)
    tt_eff = min(tt, t128)
    # Dual-TensorCore parts (v7x) need >= 2 parallel grid steps when N == 1;
    # splitting the token axis costs at most one extra ~0.35us step elsewhere,
    # which is negligible once T >= 2048.
    if n == 1 and tt_eff >= t and t128 >= 2048:
        tt_eff = min(tt_eff, _round_up((t128 + 1) // 2, 512))

    grid = (n, pl.cdiv(t, tt_eff))

    # NCHW -> (N, C, T): pure metadata reshape, no pad, no extra HBM pass.
    x_tok = x_nchw.reshape(n, c, t)

    out = pl.pallas_call(
        _mlp_kernel,
        out_shape=jax.ShapeDtypeStruct((n, c_out, t), jnp.float32),
        grid_spec=pltpu.PrefetchScalarGridSpec(
            num_scalar_prefetch=0,
            grid=grid,
            in_specs=[
                pl.BlockSpec((pl.Squeezed(), c, tt_eff),
                             lambda ni, ti: (ni, 0, ti)),         # x tile
                pl.BlockSpec((e, c), lambda ni, ti: (0, 0)),       # encoder W
                pl.BlockSpec((e, 1), lambda ni, ti: (0, 0)),       # encoder b
                pl.BlockSpec((p, e), lambda ni, ti: (0, 0)),       # mlp conv1 W
                pl.BlockSpec((p, 1), lambda ni, ti: (0, 0)),       # mlp conv1 b
                pl.BlockSpec((c_out, p), lambda ni, ti: (0, 0)),   # mlp conv2 W
                pl.BlockSpec((c_out, 1), lambda ni, ti: (0, 0)),   # mlp conv2 b
            ],
            out_specs=pl.BlockSpec((pl.Squeezed(), c_out, tt_eff),
                                   lambda ni, ti: (ni, 0, ti)),
        ),
        compiler_params=pltpu.CompilerParams(
            dimension_semantics=("parallel", "parallel"),
            vmem_limit_bytes=48 * 1024 * 1024),
    )(x_tok, we, be, w1, b1, w2, b2)

    # (N, 4, T) -> (N, 4, H, W): pure reshape, output already channels-first.
    return out.reshape(n, c_out, h, w)


def init_params(key, c_in, enc_size, num_planes, c_out=4):
    """Deterministic synthetic weights stored PyTorch-conv style (out, in),
    biases as (out, 1) so they broadcast across the token (lane) axis."""
    k = jax.random.split(key, 6)
    scale = 0.1
    return {
        "w_enc": scale * jax.random.normal(k[0], (enc_size, c_in), jnp.float32),
        "b_enc": scale * jax.random.normal(k[1], (enc_size, 1), jnp.float32),
        "w1":    scale * jax.random.normal(k[2], (num_planes, enc_size), jnp.float32),
        "b1":    scale * jax.random.normal(k[3], (num_planes, 1), jnp.float32),
        "w2":    scale * jax.random.normal(k[4], (c_out, num_planes), jnp.float32),
        "b2":    scale * jax.random.normal(k[5], (c_out, 1), jnp.float32),
    }


def _reference_forward(x_nchw, params):
    """Pure-JAX f32 reference (same math, no Pallas)."""
    n, c, h, w = x_nchw.shape
    x = x_nchw.reshape(n, c, h * w)                              # (N, C, T)
    hid = jnp.maximum(params["w_enc"] @ x + params["b_enc"], 0.0)
    hid = jnp.maximum(params["w1"] @ hid + params["b1"], 0.0)
    hid = jax.nn.sigmoid(params["w2"] @ hid + params["b2"])
    return hid.reshape(n, -1, h, w)


if __name__ == "__main__":
    # Small shapes: batch=2, in-channels=4, spatial=16x16,
    # encoder.encoded_vector_size=32, num_planes=64, num_layers=2.
    N, C_IN, H, W = 2, 4, 16, 16
    ENC_SIZE, NUM_PLANES = 32, 64

    key = jax.random.PRNGKey(0)
    kx, kp, kx1, kx2 = jax.random.split(key, 4)
    params = init_params(kp, C_IN, ENC_SIZE, NUM_PLANES)

    x = jax.random.normal(kx, (N, C_IN, H, W), jnp.float32)
    ref = _reference_forward(x, params)

    # 1) exact f32 path.
    out_f32 = jax.block_until_ready(clip2d_ccl_forward(x, params, use_bf16=False))
    assert out_f32.shape == (N, 4, H, W), out_f32.shape
    assert jnp.allclose(out_f32, ref, atol=1e-5, rtol=1e-5), "f32 mismatch"

    # 2) default bf16-MXU path (sigmoid output in [0,1] -> absolute tolerance).
    out_bf = jax.block_until_ready(clip2d_ccl_forward(x, params))
    assert out_bf.shape == (N, 4, H, W), out_bf.shape
    assert float(jnp.max(jnp.abs(out_bf - ref))) < 2e-2, "bf16 mismatch"

    # 3) N=1, H*W=300 (not a multiple of 128) -> exercises the masked
    #    partial final block (no wrapper pad/slice anymore).
    x1 = jax.random.normal(kx1, (1, C_IN, 15, 20), jnp.float32)
    out1 = jax.block_until_ready(clip2d_ccl_forward(x1, params))
    assert float(jnp.max(jnp.abs(out1 - _reference_forward(x1, params)))) < 2e-2

    # 4) N=1, H*W=2304 -> exercises the >=2-token-tile split (dual-TC path).
    x2 = jax.random.normal(kx2, (1, C_IN, 48, 48), jnp.float32)
    out2 = jax.block_until_ready(clip2d_ccl_forward(x2, params))
    assert float(jnp.max(jnp.abs(out2 - _reference_forward(x2, params)))) < 2e-2

    print("KERNEL_OK")
</pallas_src>

<mosaic_0001>
module attributes {stable_mosaic.version = 11 : i64} {
  func.func @_mlp_kernel(%arg0: i32, %arg1: i32, %arg2: memref<1x4x256xf32, #tpu.memory_space<vmem>>, %arg3: memref<32x4xf32, #tpu.memory_space<vmem>>, %arg4: memref<32x1xf32, #tpu.memory_space<vmem>>, %arg5: memref<64x32xf32, #tpu.memory_space<vmem>>, %arg6: memref<64x1xf32, #tpu.memory_space<vmem>>, %arg7: memref<4x64xf32, #tpu.memory_space<vmem>>, %arg8: memref<4x1xf32, #tpu.memory_space<vmem>>, %arg9: memref<1x4x256xf32, #tpu.memory_space<vmem>>) attributes {dimension_semantics = [#tpu.dimension_semantics<parallel>, #tpu.dimension_semantics<parallel>], iteration_bounds = array<i64: 2, 1>, scalar_prefetch = 0 : i64, scratch_operands = 0 : i64, tpu.core_type = #tpu.core_type<tc>, window_params = [{transform_indices = @transform_0, window_bounds = array<i64: 1, 4, 256>}, {pipeline_mode = #tpu.pipeline_mode<synchronous>, transform_indices = @transform_1, window_bounds = array<i64: 32, 4>}, {pipeline_mode = #tpu.pipeline_mode<synchronous>, transform_indices = @transform_2, window_bounds = array<i64: 32, 1>}, {pipeline_mode = #tpu.pipeline_mode<synchronous>, transform_indices = @transform_3, window_bounds = array<i64: 64, 32>}, {pipeline_mode = #tpu.pipeline_mode<synchronous>, transform_indices = @transform_4, window_bounds = array<i64: 64, 1>}, {pipeline_mode = #tpu.pipeline_mode<synchronous>, transform_indices = @transform_5, window_bounds = array<i64: 4, 64>}, {pipeline_mode = #tpu.pipeline_mode<synchronous>, transform_indices = @transform_6, window_bounds = array<i64: 4, 1>}, {transform_indices = @transform_7, window_bounds = array<i64: 1, 4, 256>}]} {
    %c0 = arith.constant 0 : index
    %c0_0 = arith.constant 0 : index
    %c0_1 = arith.constant 0 : index
    %0 = vector.load %arg2[%c0, %c0_0, %c0_1] : memref<1x4x256xf32, #tpu.memory_space<vmem>>, vector<1x4x256xf32>
    %1 = vector.shape_cast %0 : vector<1x4x256xf32> to vector<4x256xf32>
    %c0_2 = arith.constant 0 : index
    %c0_3 = arith.constant 0 : index
    %2 = vector.load %arg3[%c0_2, %c0_3] : memref<32x4xf32, #tpu.memory_space<vmem>>, vector<32x1xf32>
    %3 = vector.extract_strided_slice %1 {offsets = [0, 0], sizes = [1, 256], strides = [1, 1]} : vector<4x256xf32> to vector<1x256xf32>
    %4 = vector.broadcast %2 : vector<32x1xf32> to vector<32x256xf32>
    %5 = vector.broadcast %3 : vector<1x256xf32> to vector<32x256xf32>
    %6 = arith.mulf %4, %5 : vector<32x256xf32>
    %c0_4 = arith.constant 0 : index
    %c1 = arith.constant 1 : index
    %7 = vector.load %arg3[%c0_4, %c1] : memref<32x4xf32, #tpu.memory_space<vmem>>, vector<32x1xf32>
    %8 = vector.extract_strided_slice %1 {offsets = [1, 0], sizes = [1, 256], strides = [1, 1]} : vector<4x256xf32> to vector<1x256xf32>
    %9 = vector.broadcast %7 : vector<32x1xf32> to vector<32x256xf32>
    %10 = vector.broadcast %8 : vector<1x256xf32> to vector<32x256xf32>
    %11 = arith.mulf %9, %10 : vector<32x256xf32>
    %12 = arith.addf %6, %11 : vector<32x256xf32>
    %c0_5 = arith.constant 0 : index
    %c2 = arith.constant 2 : index
    %13 = vector.load %arg3[%c0_5, %c2] : memref<32x4xf32, #tpu.memory_space<vmem>>, vector<32x1xf32>
    %14 = vector.extract_strided_slice %1 {offsets = [2, 0], sizes = [1, 256], strides = [1, 1]} : vector<4x256xf32> to vector<1x256xf32>
    %15 = vector.broadcast %13 : vector<32x1xf32> to vector<32x256xf32>
    %16 = vector.broadcast %14 : vector<1x256xf32> to vector<32x256xf32>
    %17 = arith.mulf %15, %16 : vector<32x256xf32>
    %18 = arith.addf %12, %17 : vector<32x256xf32>
    %c0_6 = arith.constant 0 : index
    %c3 = arith.constant 3 : index
    %19 = vector.load %arg3[%c0_6, %c3] : memref<32x4xf32, #tpu.memory_space<vmem>>, vector<32x1xf32>
    %20 = vector.extract_strided_slice %1 {offsets = [3, 0], sizes = [1, 256], strides = [1, 1]} : vector<4x256xf32> to vector<1x256xf32>
    %21 = vector.broadcast %19 : vector<32x1xf32> to vector<32x256xf32>
    %22 = vector.broadcast %20 : vector<1x256xf32> to vector<32x256xf32>
    %23 = arith.mulf %21, %22 : vector<32x256xf32>
    %24 = arith.addf %18, %23 : vector<32x256xf32>
    %c0_7 = arith.constant 0 : index
    %c0_8 = arith.constant 0 : index
    %25 = vector.load %arg4[%c0_7, %c0_8] : memref<32x1xf32, #tpu.memory_space<vmem>>, vector<32x1xf32>
    %26 = vector.broadcast %25 : vector<32x1xf32> to vector<32x256xf32>
    %27 = arith.addf %24, %26 : vector<32x256xf32>
    %cst = arith.constant 0.000000e+00 : f32
    %28 = vector.broadcast %cst : f32 to vector<32x256xf32>
    %29 = arith.maximumf %27, %28 : vector<32x256xf32>
    %c0_9 = arith.constant 0 : index
    %c0_10 = arith.constant 0 : index
    %30 = vector.load %arg5[%c0_9, %c0_10] : memref<64x32xf32, #tpu.memory_space<vmem>>, vector<64x32xf32>
    %cst_11 = arith.constant dense<0.000000e+00> : vector<64x256xf32>
    %31 = tpu.matmul %30, %29, %cst_11 {dimension_numbers = #tpu.dot_dimension_numbers<[1], [0], [0], [1], [0, 0, 1, 1], [], []>} : vector<64x32xf32>, vector<32x256xf32>, vector<64x256xf32> -> vector<64x256xf32>
    %c0_12 = arith.constant 0 : index
    %c0_13 = arith.constant 0 : index
    %32 = vector.load %arg6[%c0_12, %c0_13] : memref<64x1xf32, #tpu.memory_space<vmem>>, vector<64x1xf32>
    %33 = vector.broadcast %32 : vector<64x1xf32> to vector<64x256xf32>
    %34 = arith.addf %31, %33 : vector<64x256xf32>
    %cst_14 = arith.constant 0.000000e+00 : f32
    %35 = vector.broadcast %cst_14 : f32 to vector<64x256xf32>
    %36 = arith.maximumf %34, %35 : vector<64x256xf32>
    %c0_15 = arith.constant 0 : index
    %c0_16 = arith.constant 0 : index
    %37 = vector.load %arg7[%c0_15, %c0_16] : memref<4x64xf32, #tpu.memory_space<vmem>>, vector<4x64xf32>
    %cst_17 = arith.constant dense<0.000000e+00> : vector<4x256xf32>
    %38 = tpu.matmul %37, %36, %cst_17 {dimension_numbers = #tpu.dot_dimension_numbers<[1], [0], [0], [1], [0, 0, 1, 1], [], []>} : vector<4x64xf32>, vector<64x256xf32>, vector<4x256xf32> -> vector<4x256xf32>
    %c0_18 = arith.constant 0 : index
    %c0_19 = arith.constant 0 : index
    %39 = vector.load %arg8[%c0_18, %c0_19] : memref<4x1xf32, #tpu.memory_space<vmem>>, vector<4x1xf32>
    %40 = vector.broadcast %39 : vector<4x1xf32> to vector<4x256xf32>
    %41 = arith.addf %38, %40 : vector<4x256xf32>
    %42 = arith.negf %41 : vector<4x256xf32>
    %43 = math.exp %42 : vector<4x256xf32>
    %cst_20 = arith.constant 1.000000e+00 : f32
    %44 = vector.broadcast %cst_20 : f32 to vector<4x256xf32>
    %45 = arith.addf %44, %43 : vector<4x256xf32>
    %46 = arith.divf %44, %45 : vector<4x256xf32>
    %c0_21 = arith.constant 0 : index
    %c0_22 = arith.constant 0 : index
    %c0_23 = arith.constant 0 : index
    %47 = vector.load %arg9[%c0_21, %c0_22, %c0_23] : memref<1x4x256xf32, #tpu.memory_space<vmem>>, vector<1x4x256xf32>
    %48 = vector.shape_cast %47 : vector<1x4x256xf32> to vector<4x256xf32>
    %49 = vector.shape_cast %46 : vector<4x256xf32> to vector<1x4x256xf32>
    tpu.vector_store %arg9[%c0_21, %c0_22, %c0_23], %49 {strides = array<i32>} : memref<1x4x256xf32, #tpu.memory_space<vmem>>, vector<1x4x256xf32>,
    return
  }
  func.func @transform_0(%arg0: i32, %arg1: i32) -> (i32, i32, i32) {
    %c0_i32 = arith.constant 0 : i32
    %c0_i32_0 = arith.constant 0 : i32
    return %arg0, %c0_i32, %arg1 : i32, i32, i32
  }
  func.func @transform_1(%arg0: i32, %arg1: i32) -> (i32, i32) {
    %c0_i32 = arith.constant 0 : i32
    %c0_i32_0 = arith.constant 0 : i32
    %c0_i32_1 = arith.constant 0 : i32
    return %c0_i32, %c0_i32_0 : i32, i32
  }
  func.func @transform_2(%arg0: i32, %arg1: i32) -> (i32, i32) {
    %c0_i32 = arith.constant 0 : i32
    %c0_i32_0 = arith.constant 0 : i32
    %c0_i32_1 = arith.constant 0 : i32
    return %c0_i32, %c0_i32_0 : i32, i32
  }
  func.func @transform_3(%arg0: i32, %arg1: i32) -> (i32, i32) {
    %c0_i32 = arith.constant 0 : i32
    %c0_i32_0 = arith.constant 0 : i32
    %c0_i32_1 = arith.constant 0 : i32
    return %c0_i32, %c0_i32_0 : i32, i32
  }
  func.func @transform_4(%arg0: i32, %arg1: i32) -> (i32, i32) {
    %c0_i32 = arith.constant 0 : i32
    %c0_i32_0 = arith.constant 0 : i32
    %c0_i32_1 = arith.constant 0 : i32
    return %c0_i32, %c0_i32_0 : i32, i32
  }
  func.func @transform_5(%arg0: i32, %arg1: i32) -> (i32, i32) {
    %c0_i32 = arith.constant 0 : i32
    %c0_i32_0 = arith.constant 0 : i32
    %c0_i32_1 = arith.constant 0 : i32
    return %c0_i32, %c0_i32_0 : i32, i32
  }
  func.func @transform_6(%arg0: i32, %arg1: i32) -> (i32, i32) {
    %c0_i32 = arith.constant 0 : i32
    %c0_i32_0 = arith.constant 0 : i32
    %c0_i32_1 = arith.constant 0 : i32
    return %c0_i32, %c0_i32_0 : i32, i32
  }
  func.func @transform_7(%arg0: i32, %arg1: i32) -> (i32, i32, i32) {
    %c0_i32 = arith.constant 0 : i32
    %c0_i32_0 = arith.constant 0 : i32
    return %arg0, %c0_i32, %arg1 : i32, i32, i32
  }
}

</mosaic_0001>

<bundles_post_ra>
// kernel: clip2d_ccl_forward.1
= control target key start
LH: loop header
LB: loop body
LE: loop exit
PB: predicated region body
PF: predicated region fallthrough
CT: control target
= control target key end

     0   :  { %s1036_s24 = smov 0   ;;  %s1038_s25 = smov 0   ;;  %s1236_s0 = inlined_call_operand.vmem [shape: f32[2,4,256], index: 0, kind: input, shape index: {}]   ;;  %s1237_s1 = inlined_call_operand.vmem [shape: f32[32,4], index: 1, kind: input, shape index: {}]   ;;  %s1238_s2 = inlined_call_operand.vmem [shape: f32[32,1], index: 2, kind: input, shape index: {}]   ;;  %s1239_s3 = inlined_call_operand.vmem [shape: f32[64,32], index: 3, kind: input, shape index: {}]   ;;  %s1240_s4 = inlined_call_operand.vmem [shape: f32[64,1], index: 4, kind: input, shape index: {}]   ;;  %s1241_s5 = inlined_call_operand.vmem [shape: f32[4,64], index: 5, kind: input, shape index: {}]   ;;  %s1242_s6 = inlined_call_operand.vmem [shape: f32[4,1], index: 6, kind: input, shape index: {}]   ;;  %s1243_s7 = inlined_call_operand.vmem [shape: f32[2,4,256], index: 7, kind: output, shape index: {}]  }
   0x1   :  { %s1040_s26 = smov 0  }
   0x2 LB: > { %s29_s27 = sadd.s32 1, %s986_s25  ;;  %p878_p0 = scmp.ge.s32.totalorder %s990_s26, 1  ;;  %s990_s26 = sphi %s1040_s26, %s17_s26   ;;  %s986_s25 = sphi %s1038_s25, %s1247_s25   ;;  %s982_s24 = sphi %s1036_s24, %s1246_s24  }
   0x3   : > { %p31_p1 = scmp.ge.s32.totalorder %s29_s27, 2  ;;  %p258_p2 = scmp.lt.s32.totalorder %s990_s26, 3 }
   0x5   : > { %s1249_s27 = smov (%p31_p1, %s29_s27), 0  ;;  %p259_p3 = pnand %p878_p0, %p258_p2 }
   0x6   : > { %p299_p4 = scmp.lt.s32.totalorder (!%p259_p3), %s982_s24, 1 }
   0x7   : > { %262 = sbr.rel (%p259_p3) target bundleno = 535 (0x217), region = 48 }
   0xc   : > { %v322_v0 = vld [vmem:[%s1237_s1 + $0x18] sm:$0xff]  ;;  %v321_v1 = vld [vmem:[%s1237_s1 + $0x10] sm:$0xff]  ;;  %v992_v2 = vmov 2   ;;  %v993_v3 = vmov 0   ;;  %v320_v4 = vld [vmem:[%s1237_s1 + $0x8] sm:$0xff]  ;;  %v994_v5 = vmov 1  }
   0xd   : > { %947 = vset.pattern.permute.xlu2 %v992_v2  ;;  %945 = vset.pattern.permute.xlu1 %v993_v3  ;;  %v995_v6 = vmov 3   ;;  %v319_v7 = vld [vmem:[%s1237_s1] sm:$0xff]  ;;  %v473_v8 = vld [vmem:[%s1238_s2 + $0x8] sm:$0xff]  ;;  %v475_v10 = vld [vmem:[%s1238_s2 + $0x18] sm:$0xff]  ;;  %s1251_s24 = smov (!%p299_p4, %s982_s24), 1  ;;  %vm568_vm0 = vcmask 261120  }
   0xe   : > { %943 = vset.pattern.permute.xlu0 %v993_v3  ;;  %409 = vperm.xlu2 %947, %v322_v0   ;;  %v524_v9 = vld [vmem:[%s1240_s4 + $0x20] sm:$0xff]  ;;  %v521_v11 = vld [vmem:[%s1240_s4 + $0x8] sm:$0xff]  ;;  %v474_v12 = vld [vmem:[%s1238_s2 + $0x10] sm:$0xff]  ;;  %s905_s20 = sshll.u32 %s1251_s24, 3  ;;  %vm698_vm1 = vcmask 523264   ;;  %vm783_vm9 = vcmask 1043456  }
   0xf   : > { %340 = vperm.xlu0 %943, %v322_v0   ;;  %335 = vperm.xlu1 %945, %v321_v1   ;;  %v472_v13 = vld [vmem:[%s1238_s2] sm:$0xff]  ;;  %v527_v14 = vld [vmem:[%s1240_s4 + $0x38] sm:$0xff]  ;;  %v526_v15 = vld [vmem:[%s1240_s4 + $0x30] sm:$0xff]  ;;  %s306_s23 = scalar_lea.vmem %s1236_s0, %s905_s20  ;;  %s316_s30 = scalar_lea.vmem %s1243_s7, %s905_s20 }
  0x10   : > { %v525_v16 = vld [vmem:[%s1240_s4 + $0x28] sm:$0xff]  ;;  %v523_v17 = vld [vmem:[%s1240_s4 + $0x18] sm:$0xff]  ;;  %v522_v18 = vld [vmem:[%s1240_s4 + $0x10] sm:$0xff] }
  0x11   : > { %v520_v19 = vld [vmem:[%s1240_s4] sm:$0xff] }
  0x12   : > { %v692_v20 = vld [vmem:[%s1242_s6] sm:$0xf] }
  0x13   : > { %v318_v26 = vld [vmem:[%s306_s23] sm:$0xff] }
  0x14   : > { %v374_v27 = vperm.slane %v318_v26, 1  ;;  %v375_v28 = vperm.slane %v318_v26, 5  ;;  %v344_v30 = vperm.slane %v318_v26, 0  ;;  %v345_v31 = vperm.slane %v318_v26, 4 }
  0x15   : > { %v412_v34 = vperm.slane %v318_v26, 2  ;;  %v413_v35 = vperm.slane %v318_v26, 6  ;;  %v450_v47 = vperm.slane %v318_v26, 3  ;;  %v451_v48 = vperm.slane %v318_v26, 7 }
  0x16   : > { %948 = vset.pattern.permute.xlu2 %v993_v3  ;;  %v1121_v32 = vperm.slane %v374_v27, 1  ;;  %v1123_v33 = vperm.slane %v375_v28, 1  ;;  %v1125_v36 = vperm.slane %v344_v30, 0  ;;  %v1127_v37 = vperm.slane %v345_v31, 0 }
  0x17   : > { %944 = vset.pattern.permute.xlu0 %v994_v5  ;;  %946 = vset.pattern.permute.xlu1 %v994_v5  ;;  %v1133_v44 = vperm.slane %v412_v34, 2  ;;  %v1135_v45 = vperm.slane %v413_v35, 2  ;;  %v1141_v55 = vperm.slane %v450_v47, 3  ;;  %v1143_v56 = vperm.slane %v451_v48, 3 }
  0x18   : > { %371 = vperm.xlu0 %944, %v322_v0   ;;  %367 = vperm.xlu1 %946, %v321_v1  }
  0x19   : > { %330 = vperm.xlu2 %948, %v320_v4  }
  0x20   : > { %950 = vset.pattern.permute.xlu0 %v995_v6  ;;  %363 = vperm.xlu1 %946, %v320_v4  }
  0x21   : > { %949 = vset.pattern.permute.xlu2 %v992_v2  ;;  %447 = vperm.xlu0 %950, %v322_v0  }
  0x22   : > { %405 = vperm.xlu2 %949, %v321_v1  }
  0x28   : > { %951 = vset.pattern.permute.xlu1 %v993_v3 }
  0x29   : > { %325 = vperm.xlu1 %951, %v319_v7   ;;  %955 = vset.pattern.permute.xlu0 %v992_v2 }
  0x2a   : > { %952 = vset.pattern.permute.xlu2 %v994_v5  ;;  %397 = vperm.xlu0 %955, %v319_v7  }
  0x2b   : > { %359 = vperm.xlu2 %952, %v319_v7  }
  0x31   : > { %953 = vset.pattern.permute.xlu1 %v992_v2 }
  0x32   : > { %401 = vperm.xlu1 %953, %v320_v4   ;;  %958 = vset.pattern.permute.xlu0 %v993_v3 }
  0x33   : > { %954 = vset.pattern.permute.xlu2 %v995_v6  ;;  %483 = vperm.xlu0 %958, %v473_v8  }
  0x34   : > { %443 = vperm.xlu2 %954, %v321_v1  }
  0x3a   : > { %956 = vset.pattern.permute.xlu1 %v995_v6 }
  0x3b   : > { %439 = vperm.xlu1 %956, %v320_v4   ;;  %550 = vperm.xlu0 %958, %v524_v9  }
  0x3c   : > { %957 = vset.pattern.permute.xlu2 %v993_v3 }
  0x3d   : > { %493 = vperm.xlu2 %957, %v475_v10  }
  0x43   : > { %435 = vperm.xlu1 %956, %v319_v7   ;;  %535 = vperm.xlu0 %958, %v521_v11  }
  0x45   : > { %488 = vperm.xlu2 %957, %v474_v12  }
  0x4b   : > { %959 = vset.pattern.permute.xlu1 %v993_v3 }
  0x4c   : > { %478 = vperm.xlu1 %959, %v472_v13  }
  0x4d   : > { %565 = vperm.xlu2 %957, %v527_v14  }
  0x54   : > { %560 = vperm.xlu1 %959, %v526_v15  }
  0x55   : > { %555 = vperm.xlu2 %957, %v525_v16  }
  0x5c   : > { %545 = vperm.xlu1 %959, %v523_v17  }
  0x5d   : > { %540 = vperm.xlu2 %957, %v522_v18  }
  0x64   : > { %530 = vperm.xlu1 %959, %v520_v19  }
  0x65   : > { %695 = vperm.xlu2 %957, %v692_v20  }
  0x68   : > { %v410_v21 = vpop.permute.xlu2 %409 }
  0x69   : > { %v424_v51 = vmul.f32 %v1133_v44, %v410_v21  ;;  %v425_v52 = vmul.f32 %v1135_v45, %v410_v21 }
  0x73   : > { %v1107_v22 = vpop.permute.xlu2 %330 }
  0x74   : > { %v352_v30 = vmul.f32 %v1125_v36, %v1107_v22  ;;  %v353_v31 = vmul.f32 %v1127_v37, %v1107_v22 }
  0x7c   : > { %v406_v23 = vpop.permute.xlu2 %405 }
  0x7d   : > { %v422_v1 = vmul.f32 %v1133_v44, %v406_v23  ;;  %v423_v2 = vmul.f32 %v1135_v45, %v406_v23 }
  0x81   : > { %v336_v24 = vpop.permute.xlu1 %335  ;;  %v341_v25 = vpop.permute.xlu0 %340 }
  0x82   : > { %v356_v40 = vmul.f32 %v1125_v36, %v341_v25  ;;  %v357_v41 = vmul.f32 %v1127_v37, %v341_v25  ;;  %v354_v58 = vmul.f32 %v1125_v36, %v336_v24  ;;  %v355_v59 = vmul.f32 %v1127_v37, %v336_v24 }
  0x85   : > { %v1119_v29 = vpop.permute.xlu2 %359 }
  0x86   : > { %v380_v22 = vmul.f32 %v1121_v32, %v1119_v29 }
  0x8a   : > { %v372_v38 = vpop.permute.xlu0 %371  ;;  %v368_v39 = vpop.permute.xlu1 %367 }
  0x8b   : > { %v386_v42 = vmul.f32 %v1121_v32, %v372_v38  ;;  %v387_v43 = vmul.f32 %v1123_v33, %v372_v38  ;;  %v384_v53 = vmul.f32 %v1121_v32, %v368_v39  ;;  %v385_v54 = vmul.f32 %v1123_v33, %v368_v39 }
  0x8d   : > { %v394_v49 = vadd.f32 %v386_v42, %v356_v40  ;;  %v395_v50 = vadd.f32 %v387_v43, %v357_v41  ;;  %v392_v3 = vadd.f32 %v384_v53, %v354_v58  ;;  %v393_v4 = vadd.f32 %v385_v54, %v355_v59 }
  0x8e   : > { %v444_v46 = vpop.permute.xlu2 %443 }
  0x8f   : > { %v432_v63 = vadd.f32 %v424_v51, %v394_v49  ;;  %v433_v0 = vadd.f32 %v425_v52, %v395_v50  ;;  %v460_v10 = vmul.f32 %v1141_v55, %v444_v46  ;;  %v461_v11 = vmul.f32 %v1143_v56, %v444_v46 }
  0x90   : > { %v430_v14 = vadd.f32 %v422_v1, %v392_v3  ;;  %v431_v15 = vadd.f32 %v423_v2, %v393_v4  ;;  %v381_v52 = vmul.f32 %v1123_v33, %v1119_v29 }
  0x92   : > { %v364_v57 = vpop.permute.xlu1 %363  ;;  %v468_v17 = vadd.f32 %v460_v10, %v430_v14  ;;  %v469_v18 = vadd.f32 %v461_v11, %v431_v15 }
  0x93   : > { %v448_v60 = vpop.permute.xlu0 %447  ;;  %v382_v26 = vmul.f32 %v1121_v32, %v364_v57  ;;  %v383_v27 = vmul.f32 %v1123_v33, %v364_v57 }
  0x94   : > { %v462_v61 = vmul.f32 %v1141_v55, %v448_v60  ;;  %v463_v62 = vmul.f32 %v1143_v56, %v448_v60 }
  0x95   : > { %v390_v38 = vadd.f32 %v382_v26, %v352_v30  ;;  %v391_v39 = vadd.f32 %v383_v27, %v353_v31 }
  0x96   : > { %v470_v5 = vadd.f32 %v462_v61, %v432_v63  ;;  %v471_v6 = vadd.f32 %v463_v62, %v433_v0 }
  0x97   : > { %v494_v7 = vpop.permute.xlu2 %493 }
  0x98   : > { %v502_v8 = vadd.f32 %v494_v7, %v470_v5  ;;  %v503_v9 = vadd.f32 %v494_v7, %v471_v6  ;;  %v512_v5 = vld [vmem:[%s1239_s3] sm:$0xff]  ;;  %v514_v6 = vld [vmem:[%s1239_s3 + $0x10] sm:$0xff]  ;;  %v519_v7 = vld [vmem:[%s1239_s3 + $0x38] sm:$0xff] }
  0x9a   : > { %v510_v12 = vmax.f32 %v502_v8, 0.0  ;;  %v511_v13 = vmax.f32 %v503_v9, 0.0  ;;  %v515_v8 = vld [vmem:[%s1239_s3 + $0x18] sm:$0xff]  ;;  %v516_v9 = vld [vmem:[%s1239_s3 + $0x20] sm:$0xff] }
  0x9b   : > { %v326_v16 = vpop.permute.xlu1 %325 }
  0x9c   : > { %605 = vmatpush.msra.mxu0 %v510_v12  ;;  %907 = vmatpush.msra.mxu2 %v510_v12  ;;  %v398_v28 = vpop.permute.xlu0 %397  ;;  %v350_v53 = vmul.f32 %v1125_v36, %v326_v16  ;;  %v351_v54 = vmul.f32 %v1127_v37, %v326_v16 }
  0x9d   : > { %646 = vmatpush.msra.mxu1 %v511_v13  ;;  %911 = vmatpush.msra.mxu3 %v511_v13  ;;  %v418_v60 = vmul.f32 %v1133_v44, %v398_v28  ;;  %v419_v63 = vmul.f32 %v1135_v45, %v398_v28 }
  0x9e   : > { %v388_v61 = vadd.f32 %v380_v22, %v350_v53  ;;  %v389_v62 = vadd.f32 %v381_v52, %v351_v54 }
  0x9f   : > { %v489_v19 = vpop.permute.xlu2 %488 }
  0xa0   : > { %v500_v20 = vadd.f32 %v489_v19, %v468_v17  ;;  %v501_v21 = vadd.f32 %v489_v19, %v469_v18  ;;  %v426_v33 = vadd.f32 %v418_v60, %v388_v61  ;;  %v427_v36 = vadd.f32 %v419_v63, %v389_v62 }
  0xa2   : > { %v508_v23 = vmax.f32 %v500_v20, 0.0  ;;  %v509_v24 = vmax.f32 %v501_v21, 0.0 }
  0xa4   : > { %606 = vmatpush.msra.mxu0 %v508_v23  ;;  %908 = vmatpush.msra.mxu2 %v508_v23  ;;  %v402_v25 = vpop.permute.xlu1 %401 }
  0xa5   : > { %647 = vmatpush.msra.mxu1 %v509_v24  ;;  %912 = vmatpush.msra.mxu3 %v509_v24  ;;  %v420_v34 = vmul.f32 %v1133_v44, %v402_v25  ;;  %v421_v35 = vmul.f32 %v1135_v45, %v402_v25  ;;  %v484_v49 = vpop.permute.xlu0 %483  ;;  %v517_v45 = vld [vmem:[%s1239_s3 + $0x28] sm:$0xff] }
  0xa7   : > { %v428_v41 = vadd.f32 %v420_v34, %v390_v38  ;;  %v429_v42 = vadd.f32 %v421_v35, %v391_v39  ;;  %v566_v16 = vpop.permute.xlu2 %565 }
  0xad   : > { %v440_v40 = vpop.permute.xlu1 %439  ;;  %v551_v39 = vpop.permute.xlu0 %550 }
  0xae   : > { %v458_v43 = vmul.f32 %v1141_v55, %v440_v40  ;;  %v459_v46 = vmul.f32 %v1143_v56, %v440_v40 }
  0xaf   : > { %v556_v27 = vpop.permute.xlu2 %555 }
  0xb0   : > { %v466_v47 = vadd.f32 %v458_v43, %v428_v41  ;;  %v467_v48 = vadd.f32 %v459_v46, %v429_v42 }
  0xb2   : > { %v498_v50 = vadd.f32 %v484_v49, %v466_v47  ;;  %v499_v51 = vadd.f32 %v484_v49, %v467_v48 }
  0xb4   : > { %v506_v57 = vmax.f32 %v498_v50, 0.0  ;;  %v507_v58 = vmax.f32 %v499_v51, 0.0 }
  0xb5   : > { %v436_v59 = vpop.permute.xlu1 %435 }
  0xb6   : > { %607 = vmatpush.msra.mxu0 %v506_v57  ;;  %909 = vmatpush.msra.mxu2 %v506_v57  ;;  %v456_v32 = vmul.f32 %v1141_v55, %v436_v59  ;;  %v457_v29 = vmul.f32 %v1143_v56, %v436_v59  ;;  %v513_v55 = vld [vmem:[%s1239_s3 + $0x8] sm:$0xff]  ;;  %v518_v56 = vld [vmem:[%s1239_s3 + $0x30] sm:$0xff]  ;;  %v536_v59 = vpop.permute.xlu0 %535 }
  0xb7   : > { %648 = vmatpush.msra.mxu1 %v507_v58  ;;  %913 = vmatpush.msra.mxu3 %v507_v58  ;;  %v541_v52 = vpop.permute.xlu2 %540 }
  0xb8   : > { %v464_v37 = vadd.f32 %v456_v32, %v426_v33  ;;  %v465_v0 = vadd.f32 %v457_v29, %v427_v36 }
  0xbe   : > { %v479_v1 = vpop.permute.xlu1 %478 }
  0xbf   : > { %v496_v2 = vadd.f32 %v479_v1, %v464_v37  ;;  %v497_v3 = vadd.f32 %v479_v1, %v465_v0 }
  0xc1   : > { %v504_v44 = vmax.f32 %v496_v2, 0.0  ;;  %v505_v4 = vmax.f32 %v497_v3, 0.0 }
  0xc3   : > { %608 = vmatpush.msra.mxu0 %v504_v44  ;;  %910 = vmatpush.msra.mxu2 %v504_v44 }
  0xc4   : > { %649 = vmatpush.msra.mxu1 %v505_v4  ;;  %914 = vmatpush.msra.mxu3 %v505_v4  ;;  %v691_v4 = vld [vmem:[%s1241_s5] sm:$0xf] }
  0xc5   : > { %883 = vmatmul.msk.f32.vlgmr.msra.gmra.mxu0 %vm568_vm0, %v512_v5  ;;  %888 = vmatmul.msk.f32.vlgmr.msra.gmra.mxu2 %vm568_vm0, %v517_v45 }
  0xc6   : > { %891 = vmatmul.msk.f32.vlgmr.msra.gmra.mxu1 %vm568_vm0, %v512_v5  ;;  %896 = vmatmul.msk.f32.vlgmr.msra.gmra.mxu3 %vm568_vm0, %v517_v45  ;;  %v561_v21 = vpop.permute.xlu1 %560  ;;  %v696_v45 = vpop.permute.xlu2 %695 }
  0xcd   : > { %884 = vmatmul.msk.f32.gmra.mxu0 %vm568_vm0, %v513_v55  ;;  %889 = vmatmul.msk.f32.gmra.mxu2 %vm568_vm0, %v518_v56 }
  0xce   : > { %892 = vmatmul.msk.f32.gmra.mxu1 %vm568_vm0, %v513_v55  ;;  %897 = vmatmul.msk.f32.gmra.mxu3 %vm568_vm0, %v518_v56  ;;  %v546_v43 = vpop.permute.xlu1 %545 }
  0xd5   : > { %885 = vmatmul.msk.f32.gmra.mxu0 %vm568_vm0, %v514_v6  ;;  %890 = vmatmul.msk.f32.gmra.mxu2 %vm568_vm0, %v519_v7 }
  0xd6   : > { %893 = vmatmul.msk.f32.gmra.mxu1 %vm568_vm0, %v514_v6  ;;  %898 = vmatmul.msk.f32.gmra.mxu3 %vm568_vm0, %v519_v7  ;;  %v531_v32 = vpop.permute.xlu1 %530 }
  0xdd   : > { %886 = vmatmul.msk.f32.gmra.mxu0 %vm568_vm0, %v515_v8 }
  0xde   : > { %894 = vmatmul.msk.f32.gmra.mxu1 %vm568_vm0, %v515_v8 }
  0xe5   : > { %887 = vmatmul.msk.f32.gmra.mxu0 %vm568_vm0, %v516_v9 }
  0xe6   : > { %895 = vmatmul.msk.f32.gmra.mxu1 %vm568_vm0, %v516_v9 }
 0x142   : > { %v610_v10 = vpop.f32.mrf.mxu0 }
 0x143   : > { %v651_v11 = vpop.f32.mrf.mxu1  ;;  %v611_v36 = vadd.f32 %v610_v10, %v531_v32 }
 0x144   : > { %v652_v0 = vadd.f32 %v651_v11, %v531_v32 }
 0x145   : > { %v675_v44 = vmax.f32 %v611_v36, 0.0 }
 0x146   : > { %v676_v5 = vmax.f32 %v652_v0, 0.0 }
 0x148   : > { %v625_v12 = vpop.f32.mrf.mxu2 }
 0x149   : > { %v666_v13 = vpop.f32.mrf.mxu3  ;;  %v626_v34 = vadd.f32 %v625_v12, %v556_v27 }
 0x14a   : > { %v613_v14 = vpop.f32.mrf.mxu0  ;;  %v667_v40 = vadd.f32 %v666_v13, %v556_v27 }
 0x14b   : > { %v654_v15 = vpop.f32.mrf.mxu1  ;;  %v685_v47 = vmax.f32 %v626_v34, 0.0  ;;  %v614_v62 = vadd.f32 %v613_v14, %v536_v59 }
 0x14c   : > { %v686_v48 = vmax.f32 %v667_v40, 0.0  ;;  %v655_v29 = vadd.f32 %v654_v15, %v536_v59 }
 0x14d   : > { %v677_v2 = vmax.f32 %v614_v62, 0.0 }
 0x14e   : > { %v678_v3 = vmax.f32 %v655_v29, 0.0 }
 0x150   : > { %v628_v17 = vpop.f32.mrf.mxu2 }
 0x151   : > { %v669_v18 = vpop.f32.mrf.mxu3  ;;  %v629_v24 = vadd.f32 %v628_v17, %v561_v21 }
 0x152   : > { %v616_v19 = vpop.f32.mrf.mxu0  ;;  %v670_v28 = vadd.f32 %v669_v18, %v561_v21 }
 0x153   : > { %v657_v20 = vpop.f32.mrf.mxu1  ;;  %v687_v42 = vmax.f32 %v629_v24, 0.0  ;;  %v617_v57 = vadd.f32 %v616_v19, %v541_v52 }
 0x154   : > { %v688_v46 = vmax.f32 %v670_v28, 0.0  ;;  %v658_v60 = vadd.f32 %v657_v20, %v541_v52 }
 0x155   : > { %v679_v37 = vmax.f32 %v617_v57, 0.0 }
 0x156   : > { %v680_v1 = vmax.f32 %v658_v60, 0.0 }
 0x158   : > { %v631_v23 = vpop.f32.mrf.mxu2 }
 0x159   : > { %v632_v25 = vadd.f32 %v631_v23, %v566_v16  ;;  %v672_v26 = vpop.f32.mrf.mxu3 }
 0x15a   : > { %v673_v30 = vadd.f32 %v672_v26, %v566_v16  ;;  %v619_v31 = vpop.f32.mrf.mxu0 }
 0x15b   : > { %v689_v35 = vmax.f32 %v632_v25, 0.0  ;;  %v660_v38 = vpop.f32.mrf.mxu1  ;;  %v620_v50 = vadd.f32 %v619_v31, %v546_v43 }
 0x15c   : > { %v690_v41 = vmax.f32 %v673_v30, 0.0  ;;  %v661_v53 = vadd.f32 %v660_v38, %v546_v43 }
 0x15d   : > { %710 = vmatpush.msrb.mxu2 %v689_v35  ;;  %v681_v63 = vmax.f32 %v620_v50, 0.0 }
 0x15e   : > { %730 = vmatpush.msrb.mxu3 %v690_v41  ;;  %v682_v33 = vmax.f32 %v661_v53, 0.0 }
 0x15f   : > { %711 = vmatpush.msrb.mxu2 %v687_v42 }
 0x160   : > { %731 = vmatpush.msrb.mxu3 %v688_v46 }
 0x161   : > { %712 = vmatpush.msrb.mxu2 %v685_v47 }
 0x162   : > { %732 = vmatpush.msrb.mxu3 %v686_v48  ;;  %v622_v49 = vpop.f32.mrf.mxu0 }
 0x163   : > { %v623_v51 = vadd.f32 %v622_v49, %v551_v39  ;;  %v663_v22 = vpop.f32.mrf.mxu1 }
 0x164   : > { %v664_v54 = vadd.f32 %v663_v22, %v551_v39 }
 0x165   : > { %v683_v58 = vmax.f32 %v623_v51, 0.0 }
 0x166   : > { %v684_v61 = vmax.f32 %v664_v54, 0.0 }
 0x167   : > { %713 = vmatpush.msrb.mxu2 %v683_v58 }
 0x168   : > { %733 = vmatpush.msrb.mxu3 %v684_v61 }
 0x169   : > { %714 = vmatpush.msrb.mxu2 %v681_v63 }
 0x16a   : > { %734 = vmatpush.msrb.mxu3 %v682_v33 }
 0x16b   : > { %715 = vmatpush.msrb.mxu2 %v679_v37 }
 0x16c   : > { %735 = vmatpush.msrb.mxu3 %v680_v1 }
 0x16d   : > { %716 = vmatpush.msrb.mxu2 %v677_v2 }
 0x16e   : > { %736 = vmatpush.msrb.mxu3 %v678_v3 }
 0x16f   : > { %717 = vmatpush.msrb.mxu2 %v675_v44 }
 0x170   : > { %737 = vmatpush.msrb.mxu3 %v676_v5  ;;  %899 = vmatmul.msk.f32.vlgmr.msrb.gmra.mxu2 %vm698_vm1, %v691_v4 }
 0x171   : > { %900 = vmatmul.msk.f32.vlgmr.msrb.gmra.mxu3 %vm698_vm1, %v691_v4 }
 0x1f3   : > { %v719_v55 = vpop.f32.mrf.mxu2 }
 0x1f4   : > { %v720_v56 = vadd.f32 %v719_v55, %v696_v45  ;;  %v739_v6 = vpop.f32.mrf.mxu3 }
 0x1f5   : > { %v740_v7 = vadd.f32 %v739_v6, %v696_v45 }
 0x1f6   : > { %v901_v8 = vmul.f32 -1.442695, %v720_v56 }
 0x1f7   : > { %v902_v9 = vmul.f32 -1.442695, %v740_v7 }
 0x1f8   : > { %960 = vpow2.f32 %v901_v8 }
 0x1f9   : > { %962 = vpow2.f32 %v902_v9 }
 0x1fe   : > { %v961_v10 = vpop.eup %960 }
 0x1ff   : > { %v963_v11 = vpop.eup %962  ;;  %v748_v12 = vadd.f32 1.0, %v961_v10 }
 0x200   : > { %v749_v13 = vadd.f32 1.0, %v963_v11 }
 0x201   : > { %964 = vrcp.f32 %v748_v12  ;;  %vm755_vm4 = vweird.f32 %v748_v12  ;;  %v761_v26 = vand.u32 2147483648, %v748_v12  ;;  %v759_v28 = vand.u32 2147483647, %v748_v12 }
 0x202   : > { %966 = vrcp.f32 %v749_v13  ;;  %v776_v21 = vand.u32 2147483648, %v749_v13  ;;  %v774_v24 = vand.u32 2147483647, %v749_v13  ;;  %vm770_vm6 = vweird.f32 %v749_v13 }
 0x203   : > { %v762_v38 = vor.u32 1.1754944e-38, %v761_v26  ;;  %vm760_vm10 = vcmp.eq.f32.partialorder %v759_v28, 8.507059e+37 }
 0x204   : > { %v777_v31 = vor.u32 1.1754944e-38, %v776_v21  ;;  %vm775_vm8 = vcmp.eq.f32.partialorder %v774_v24, 8.507059e+37 }
 0x207   : > { %v965_v14 = vpop.eup %964 }
 0x208   : > { %v967_v15 = vpop.eup %966  ;;  %v751_v16 = vmul.f32 %v965_v14, %v748_v12  ;;  %vm756_vm2 = vweird.f32 %v965_v14 }
 0x209   : > { %v766_v17 = vmul.f32 %v967_v15, %v749_v13  ;;  %vm771_vm3 = vweird.f32 %v967_v15  ;;  %vm1216_vm5 = vmor %vm755_vm4, %vm756_vm2 }
 0x20a   : > { %v752_v18 = vsub.f32 1.0, %v751_v16  ;;  %vm772_vm7 = vmor %vm770_vm6, %vm771_vm3 }
 0x20b   : > { %v767_v19 = vsub.f32 1.0, %v766_v17 }
 0x20c   : > { %v753_v20 = vmul.f32 %v965_v14, %v752_v18 }
 0x20d   : > { %v768_v23 = vmul.f32 %v967_v15, %v767_v19 }
 0x20e   : > { %v754_v25 = vadd.f32 %v965_v14, %v753_v20 }
 0x20f   : > { %v769_v30 = vadd.f32 %v967_v15, %v768_v23 }
 0x210   : > { %v758_v34 = vsel %vm1216_vm5, %v965_v14, %v754_v25 }
 0x211   : > { %v773_v35 = vsel %vm772_vm7, %v967_v15, %v769_v30  ;;  %v763_v41 = vsel %vm760_vm10, %v762_v38, %v758_v34 }
 0x212   : > { %v778_v39 = vsel %vm775_vm8, %v777_v31, %v773_v35 }
 0x213   : > { %v782_v40 = vrot.slane %v778_v39, 4 }
 0x215   : > { %v784_v42 = vsel %vm783_vm9, %v763_v41, %v782_v40 }
 0x216   : > { %786 = vst [vmem:[%s316_s30] sm:$0xff] %v784_v42 }
 0x217 PF: > { %s17_s26 = sadd.s32 1, %s990_s26   ;;  %s1246_s24 = smov %s986_s25 }
 0x218   : > { %p14_p5 = scmp.ge.s32.totalorder %s17_s26, 4   ;;  %s1247_s25 = smov %s1249_s27 }
 0x21a   :  { %16 = sbr.rel (!%p14_p5) target bundleno = 2 (0x2), region = 78 }

</bundles_post_ra>
